<compile_context>
chip_gen: v7x
topology: tpu7x:2x2x1
jax: 0.10.0
libtpu: 0.0.40
codegen_flags: <defaults>
</compile_context>

<pallas_src>
import jax
import jax.numpy as jnp
from jax import lax
from jax.experimental import pallas as pl
from jax.experimental.pallas import tpu as pltpu


def _round_up(a, b):
    return (a + b - 1) // b * b


def _ab_t_kernel(a_ref, b_ref, o_ref):
    # One MXU contraction per grid step: (bm, D) x (bn, D)^T -> (bm, bn).
    # trans-B (contract dim 1 of both) is the native attention-style layout on
    # TPU, so Mosaic feeds the MXU without an XLU transpose of the b tile.
    # TODO(synk): if lower_as_mlir ever shows a per-tile vxpose here, pass b
    # pre-transposed as (D, N) from the wrapper and use a plain dot.
    o_ref[...] = lax.dot_general(
        a_ref[...],
        b_ref[...],
        dimension_numbers=(((1,), (1,)), ((), ())),
        preferred_element_type=jnp.float32,
    ).astype(o_ref.dtype)


def _ab_t(a, b, *, bm, bn, out_dtype, vmem_budget_bytes=24 * 1024 * 1024):
    """Tiled out = a @ b.T with a: (M, D), b: (N, D) -> (M, N)."""
    M, D = a.shape
    N, D2 = b.shape
    assert D == D2, (a.shape, b.shape)

    in_itemsize = jnp.dtype(a.dtype).itemsize
    out_itemsize = jnp.dtype(out_dtype).itemsize
    row_align = 16 if in_itemsize < 4 else 8   # bf16 packs 2 rows per sublane
    lane_align = 128                           # keep output stores lane-dense

    # Clamp requested tiles to the (aligned) problem size.
    bm = max(row_align, min(_round_up(bm, row_align), _round_up(M, row_align)))
    bn = max(lane_align, min(_round_up(bn, lane_align), _round_up(N, lane_align)))

    # Defensive VMEM cap (matters on v7x: 64 MiB physical / 32 MiB scoped
    # default); double-buffered output tile + double-buffered input tiles.
    def footprint(bm_, bn_):
        return 2 * (bm_ * bn_ * out_itemsize + (bm_ + bn_) * D * in_itemsize)

    while footprint(bm, bn) > vmem_budget_bytes and bn > lane_align:
        bn = _round_up(bn // 2, lane_align)
    while footprint(bm, bn) > vmem_budget_bytes and bm > row_align:
        bm = _round_up(bm // 2, row_align)

    # Keep >= 2 grid tiles along one "parallel" axis so v7x's two TensorCores
    # both get work even when the whole problem fits in a single tile.
    if pl.cdiv(M, bm) == 1 and pl.cdiv(N, bn) == 1:
        if M >= 2 * row_align:
            bm = _round_up(pl.cdiv(M, 2), row_align)
        elif N >= 2 * lane_align:
            bn = _round_up(pl.cdiv(N, 2), lane_align)

    grid = (pl.cdiv(M, bm), pl.cdiv(N, bn))

    cost = pl.CostEstimate(
        flops=2 * M * N * D,
        transcendentals=0,
        bytes_accessed=(M * D + N * D) * in_itemsize + M * N * out_itemsize,
    )

    return pl.pallas_call(
        _ab_t_kernel,
        out_shape=jax.ShapeDtypeStruct((M, N), out_dtype),
        grid_spec=pltpu.PrefetchScalarGridSpec(
            num_scalar_prefetch=0,
            grid=grid,
            in_specs=[
                # a tile varies with i only; contraction dim stays whole.
                pl.BlockSpec((bm, D), lambda i, j: (i, 0)),
                # b tile varies with j only.
                pl.BlockSpec((bn, D), lambda i, j: (j, 0)),
            ],
            # Lane-dense output tile; Mosaic masks the ragged boundary tiles,
            # so no explicit padding / slicing passes are needed.
            out_specs=pl.BlockSpec((bm, bn), lambda i, j: (i, j)),
        ),
        compiler_params=pltpu.CompilerParams(
            dimension_semantics=("parallel", "parallel"),
        ),
        cost_estimate=cost,
    )(a, b)


def mi_kernel_forward(
    x,
    z,
    weight,
    *,
    bm=512,
    bn=1024,
    compute_dtype=None,
    out_dtype=jnp.float32,
    allow_fallback=True,
    fallback_elems=16384,
):
    """Compute einsum('ki,ij,lj->kl', z, weight, x).

    x:      (L, input_dim)
    z:      (K, z_dim)
    weight: (z_dim, input_dim)
    returns (K, L) in `out_dtype` (float32 by default)

    compute_dtype: optional cast of the big-matmul operands (e.g. jnp.bfloat16
    on v6e/v7x); accumulation stays float32 inside the kernel.
    """
    K, z_dim = z.shape
    L, input_dim = x.shape
    assert weight.shape == (z_dim, input_dim)

    # Tiny problems: pallas_call launch / pipeline overhead dwarfs the math;
    # let XLA fuse a plain einsum into neighbors instead.
    if allow_fallback and K * L < fallback_elems:
        return jnp.einsum("ki,ij,lj->kl", z, weight, x).astype(out_dtype)

    # The (K, L) output dominates HBM traffic (contraction dims are only 32
    # wide), so the first, tiny matmul is hoisted out of the kernel and done
    # once in XLA; the kernel is a single tiled A @ B^T.
    #
    # Orientation: swap only when the direct layout would force masked narrow
    # stores (L < 128); otherwise the extra transpose pass over the (K, L)
    # result costs more than lane density saves.
    swap = (L < 128) and (K > L)
    if swap:
        # out^T = (x @ W^T) @ z^T
        a = jnp.dot(x, weight.T, preferred_element_type=jnp.float32)  # (L, z_dim)
        b = z                                                         # (K, z_dim)
    else:
        # out = (z @ W) @ x^T
        a = jnp.dot(z, weight, preferred_element_type=jnp.float32)    # (K, input_dim)
        b = x                                                         # (L, input_dim)

    compute = jnp.dtype(compute_dtype) if compute_dtype is not None else jnp.dtype(jnp.float32)
    a = a.astype(compute)
    b = b.astype(compute)

    out = _ab_t(a, b, bm=bm, bn=bn, out_dtype=out_dtype)
    return out.T if swap else out


if __name__ == "__main__":
    # Small shapes consistent with the module: input_dim = z_dim = 32.
    input_dim, z_dim = 32, 32

    key = jax.random.PRNGKey(0)
    kx, kz, kw, kx2, kz2, kx3, kz3 = jax.random.split(key, 7)

    # The module zero-inits the parameter (output would be trivially zero);
    # use a deterministic non-trivial value so the check is meaningful.
    weight = jax.random.normal(kw, (z_dim, input_dim), dtype=jnp.float32) * 0.02

    # 1) Module-scale shapes (K = L = 8); force the Pallas path (the
    #    auto-fallback would otherwise route this tiny case to plain einsum).
    K, L = 8, 8
    x = jax.random.normal(kx, (L, input_dim), dtype=jnp.float32)
    z = jax.random.normal(kz, (K, z_dim), dtype=jnp.float32)
    out = jax.block_until_ready(mi_kernel_forward(x, z, weight, allow_fallback=False))
    ref = jnp.einsum("ki,ij,lj->kl", z, weight, x)
    assert out.shape == (K, L)
    assert jnp.allclose(out, ref, atol=1e-4, rtol=1e-4)

    # 2) Multi-tile grid with ragged boundary tiles (no pad, no slice).
    K2, L2 = 300, 200
    x2 = jax.random.normal(kx2, (L2, input_dim), dtype=jnp.float32)
    z2 = jax.random.normal(kz2, (K2, z_dim), dtype=jnp.float32)
    out2 = jax.block_until_ready(mi_kernel_forward(x2, z2, weight))
    ref2 = jnp.einsum("ki,ij,lj->kl", z2, weight, x2)
    assert out2.shape == (K2, L2)
    assert jnp.allclose(out2, ref2, atol=1e-3, rtol=1e-3)

    # 3) Narrow-L orientation-swap path (L < 128 <= K).
    K3, L3 = 300, 40
    x3 = jax.random.normal(kx3, (L3, input_dim), dtype=jnp.float32)
    z3 = jax.random.normal(kz3, (K3, z_dim), dtype=jnp.float32)
    out3 = jax.block_until_ready(
        mi_kernel_forward(x3, z3, weight, allow_fallback=False)
    )
    ref3 = jnp.einsum("ki,ij,lj->kl", z3, weight, x3)
    assert out3.shape == (K3, L3)
    assert jnp.allclose(out3, ref3, atol=1e-3, rtol=1e-3)

    # 4) bf16 compute path (f32 accumulate, f32 output); looser tolerance for
    #    the documented bf16 rounding of the hoisted intermediate.
    out4 = jax.block_until_ready(
        mi_kernel_forward(x2, z2, weight, compute_dtype=jnp.bfloat16)
    )
    assert out4.shape == (K2, L2)
    assert jnp.allclose(out4, ref2, atol=5e-2, rtol=5e-2)

    print("KERNEL_OK")
</pallas_src>

<mosaic_0001>
module attributes {stable_mosaic.version = 11 : i64} {
  func.func @_ab_t_kernel(%arg0: i32, %arg1: i32, %arg2: memref<8x32xf32, #tpu.memory_space<vmem>>, %arg3: memref<128x32xf32, #tpu.memory_space<vmem>>, %arg4: memref<8x128xf32, #tpu.memory_space<vmem>>) attributes {dimension_semantics = [#tpu.dimension_semantics<parallel>, #tpu.dimension_semantics<parallel>], iteration_bounds = array<i64: 1, 1>, scalar_prefetch = 0 : i64, scratch_operands = 0 : i64, tpu.core_type = #tpu.core_type<tc>, window_params = [{transform_indices = @transform_0, window_bounds = array<i64: 8, 32>}, {transform_indices = @transform_1, window_bounds = array<i64: 128, 32>}, {transform_indices = @transform_2, window_bounds = array<i64: 8, 128>}]} {
    %c0 = arith.constant 0 : index
    %c0_0 = arith.constant 0 : index
    %0 = vector.load %arg2[%c0, %c0_0] : memref<8x32xf32, #tpu.memory_space<vmem>>, vector<8x32xf32>
    %c0_1 = arith.constant 0 : index
    %c0_2 = arith.constant 0 : index
    %1 = vector.load %arg3[%c0_1, %c0_2] : memref<128x32xf32, #tpu.memory_space<vmem>>, vector<128x32xf32>
    %cst = arith.constant dense<0.000000e+00> : vector<8x128xf32>
    %2 = tpu.matmul %0, %1, %cst {dimension_numbers = #tpu.dot_dimension_numbers<[1], [1], [0], [0], [0, 0, 1, 0], [], []>} : vector<8x32xf32>, vector<128x32xf32>, vector<8x128xf32> -> vector<8x128xf32>
    %c0_3 = arith.constant 0 : index
    %c0_4 = arith.constant 0 : index
    %3 = vector.load %arg4[%c0_3, %c0_4] : memref<8x128xf32, #tpu.memory_space<vmem>>, vector<8x128xf32>
    tpu.vector_store %arg4[%c0_3, %c0_4], %2 {strides = array<i32>} : memref<8x128xf32, #tpu.memory_space<vmem>>, vector<8x128xf32>,
    return
  }
  func.func @transform_0(%arg0: i32, %arg1: i32) -> (i32, i32) {
    %c0_i32 = arith.constant 0 : i32
    %c0_i32_0 = arith.constant 0 : i32
    return %arg0, %c0_i32 : i32, i32
  }
  func.func @transform_1(%arg0: i32, %arg1: i32) -> (i32, i32) {
    %c0_i32 = arith.constant 0 : i32
    %c0_i32_0 = arith.constant 0 : i32
    return %arg1, %c0_i32 : i32, i32
  }
  func.func @transform_2(%arg0: i32, %arg1: i32) -> (i32, i32) {
    %c0_i32 = arith.constant 0 : i32
    return %arg0, %arg1 : i32, i32
  }
}

</mosaic_0001>

<bundles_post_ra>
// kernel: tpu_custom_call.1
= control target key start
LH: loop header
LB: loop body
LE: loop exit
PB: predicated region body
PF: predicated region fallthrough
CT: control target
= control target key end

     0   :  { %7 = vsyncpa [#allocation3], 0  ;;  %s457_s0 = inlined_call_operand.hbm [shape: f32[8,32], index: 0, kind: input, shape index: {}]   ;;  %s458_s1 = inlined_call_operand.hbm [shape: f32[8,32], index: 1, kind: input, shape index: {}]   ;;  %s459_s2 = inlined_call_operand.hbm [shape: f32[8,8], index: 2, kind: output, shape index: {}]  }
   0x1   :  { %8 = vsyncpa [#allocation6], 0 }
   0x2   :  { %9 = vsyncpa [#allocation4], 0  ;;  %s375_s9 = smov [#allocation2]   ;;  %s303_s13 = scalar_lea.hbm %s457_s0, 128 }
   0x3   :  { %s16_s10 = sshll.u32 %s375_s9, 4  ;;  %p304_p0 = scmp.ne.s32.totalorder %s457_s0, %s303_s13  ;;  %s17_s10 = int_to_ptr.vmem [resolvable:$true] %s16_s10 }
   0x4   :  { %p307_p1 = scmp.lt.u32.totalorder %s303_s13, %s457_s0 }
   0x6   :  { %p309_p2 = pnand %p307_p1, %p304_p0 }
   0x8   :  { %312 = shalt.err (!%p309_p2)
}
   0x9   :  { %s313_s18 = scalar_lea.vmem %s17_s10, 128  ;;  %p318_p4 = scmp.lt.s32.totalorder %s17_s10, %s17_s10 }
   0xa   :  { %p314_p3 = scmp.ne.s32.totalorder %s17_s10, %s313_s18  ;;  %p319_p5 = scmp.lt.s32.totalorder %s313_s18, %s313_s18 }
   0xc   :  { %p320_p6 = por %p319_p5, %p318_p4 }
   0xe   :  { %p321_p7 = pnand %p320_p6, %p314_p3 }
  0x10   :  { %324 = shalt.err (!%p321_p7)
}
  0x11   :  { %19 = dma.hbm_to_vmem [thread:$0]  %s457_s0, 128, %s17_s10, [#allocation3]  }
  0x12   :  { %24 = vsyncadd [#allocation6], 1920  ;;  %s376_s21 = smov [#allocation5]   ;;  %s325_s25 = scalar_lea.hbm %s458_s1, 128 }
  0x13   :  { %s25_s22 = sshll.u32 %s376_s21, 4  ;;  %p326_p8 = scmp.ne.s32.totalorder %s458_s1, %s325_s25  ;;  %s26_s22 = int_to_ptr.vmem [resolvable:$true] %s25_s22 }
  0x14   :  { %p329_p9 = scmp.lt.u32.totalorder %s325_s25, %s458_s1 }
  0x16   :  { %p331_p10 = pnand %p329_p9, %p326_p8 }
  0x18   :  { %334 = shalt.err (!%p331_p10)
}
  0x19   :  { %s335_s30 = scalar_lea.vmem %s26_s22, 128  ;;  %s339_s0 = scalar_lea.vmem %s26_s22, 2048 }
  0x1a   :  { %p336_p11 = scmp.ne.s32.totalorder %s26_s22, %s335_s30  ;;  %p340_p12 = scmp.lt.s32.totalorder %s26_s22, %s26_s22 }
  0x1b   :  { %p341_p13 = scmp.lt.s32.totalorder %s339_s0, %s335_s30 }
  0x1d   :  { %p342_p0 = por %p341_p13, %p340_p12 }
  0x1f   :  { %p343_p1 = pnand %p342_p0, %p336_p11 }
  0x21   :  { %346 = shalt.err (!%p343_p1)
}
  0x22   :  { %s377_s3 = smov 128   ;;  %s378_s4 = smov 8  }
  0x23   :  { %31 = dma.hbm_to_vmem [thread:$0]  %s458_s1, 128, %s26_s22, [#allocation6], %s377_s3, %s377_s3, %s378_s4  }
  0x24   :  { %369 = dma.done.wait [#allocation3], 128  }
  0x25   :  { %370 = vsyncadd [#allocation3], 4294967168 }
  0x26   :  { %371 = dma.done.wait [#allocation6], 2048  }
  0x27   :  { %372 = vsyncadd [#allocation6], 4294965248  ;;  %v379_v0 = vmov 0.0|0.0   ;;  %vm380_vm0 = vmmov 0   ;;  %v381_v1 = vmov 0.0   ;;  %vm55_vm1 = vcmask 261120  }
  0x28   :  { %263 = vmatprep.subr.bf16.mxu0 %v379_v0  ;;  %260 = vmatprep.mubr.msk.f32.mxu0 %vm380_vm0, %v381_v1  ;;  %v39_v2 = vld [vmem:[#allocation5] sm:$0xff]  ;;  %v40_v3 = vld [vmem:[#allocation5 + $0x8] sm:$0xff]  ;;  %vm424_vm2 = vmpackc.low %vm55_vm1, %vm55_vm1  ;;  %s382_s1 = smov [#allocation7]  }
  0x29   :  { %v264_v5 = vpack.c.bf16 %v40_v3, %v39_v2  ;;  %v41_v6 = vld [vmem:[#allocation5 + $0x10] sm:$0xff]  ;;  %v42_v7 = vld [vmem:[#allocation5 + $0x18] sm:$0xff]  ;;  %v43_v9 = vld [vmem:[#allocation5 + $0x20] sm:$0xff]  ;;  %s184_s7 = sshll.u32 %s382_s1, 4  ;;  %s185_s7 = int_to_ptr.vmem [resolvable:$true] %s184_s7 }
  0x2a   :  { %v268_v8 = vpack.c.bf16 %v42_v7, %v41_v6  ;;  %v44_v10 = vld [vmem:[#allocation5 + $0x28] sm:$0xff]  ;;  %v45_v12 = vld [vmem:[#allocation5 + $0x30] sm:$0xff]  ;;  %v46_v13 = vld [vmem:[#allocation5 + $0x38] sm:$0xff]  ;;  %s347_s8 = scalar_lea.vmem %s185_s7, 128  ;;  %p352_p3 = scmp.lt.s32.totalorder %s185_s7, %s185_s7 }
  0x2b   :  { %266 = vmatpush3.bf16.xpose.msk.msra.mxu0 %vm424_vm2, %v264_v5  ;;  %v272_v11 = vpack.c.bf16 %v44_v10, %v43_v9  ;;  %v276_v14 = vpack.c.bf16 %v46_v13, %v45_v12  ;;  %v47_v15 = vld [vmem:[#allocation5 + $0x40] sm:$0xff]  ;;  %v48_v16 = vld [vmem:[#allocation5 + $0x48] sm:$0xff]  ;;  %v49_v18 = vld [vmem:[#allocation5 + $0x50] sm:$0xff]  ;;  %p348_p2 = scmp.ne.s32.totalorder %s185_s7, %s347_s8  ;;  %p353_p4 = scmp.lt.s32.totalorder %s347_s8, %s347_s8 }
  0x2c   :  { %267 = vmatprep.subr.bf16.mxu0 %v379_v0  ;;  %v280_v17 = vpack.c.bf16 %v48_v16, %v47_v15  ;;  %v50_v19 = vld [vmem:[#allocation5 + $0x58] sm:$0xff]  ;;  %v51_v21 = vld [vmem:[#allocation5 + $0x60] sm:$0xff]  ;;  %v52_v22 = vld [vmem:[#allocation5 + $0x68] sm:$0xff] }
  0x2d   :  { %v284_v20 = vpack.c.bf16 %v50_v19, %v49_v18  ;;  %v288_v23 = vpack.c.bf16 %v52_v22, %v51_v21  ;;  %v53_v24 = vld [vmem:[#allocation5 + $0x70] sm:$0xff]  ;;  %v54_v25 = vld [vmem:[#allocation5 + $0x78] sm:$0xff]  ;;  %p354_p5 = por %p353_p4, %p352_p3 }
  0x2e   :  { %v292_v26 = vpack.c.bf16 %v54_v25, %v53_v24  ;;  %v38_v27 = vld [vmem:[#allocation2] sm:$0xff] }
  0x2f   :  { %p355_p6 = pnand %p354_p5, %p348_p2 }
  0x33   :  { %270 = vmatpush3.bf16.xpose.msk.msra.mxu0 %vm424_vm2, %v268_v8 }
  0x34   :  { %271 = vmatprep.subr.bf16.mxu0 %v379_v0 }
  0x3b   :  { %274 = vmatpush3.bf16.xpose.msk.msra.mxu0 %vm424_vm2, %v272_v11 }
  0x3c   :  { %275 = vmatprep.subr.bf16.mxu0 %v379_v0 }
  0x43   :  { %278 = vmatpush3.bf16.xpose.msk.msra.mxu0 %vm424_vm2, %v276_v14 }
  0x44   :  { %279 = vmatprep.subr.bf16.mxu0 %v379_v0 }
  0x4b   :  { %282 = vmatpush3.bf16.xpose.msk.msra.mxu0 %vm424_vm2, %v280_v17 }
  0x4c   :  { %283 = vmatprep.subr.bf16.mxu0 %v379_v0 }
  0x53   :  { %286 = vmatpush3.bf16.xpose.msk.msra.mxu0 %vm424_vm2, %v284_v20 }
  0x54   :  { %287 = vmatprep.subr.bf16.mxu0 %v379_v0 }
  0x5b   :  { %290 = vmatpush3.bf16.xpose.msk.msra.mxu0 %vm424_vm2, %v288_v23 }
  0x5c   :  { %291 = vmatprep.subr.bf16.mxu0 %v379_v0 }
  0x63   :  { %294 = vmatpush3.bf16.xpose.msk.msra.mxu0 %vm424_vm2, %v292_v26 }
  0x6a   :  { %261 = vmatmul.mubr.msk.f32.vlgmr.msra.gmra.mrb[0].mxu0 %vm55_vm1, %v38_v27 }
 0x13d   :  { %v173_v28 = vpop.f32.mrb[0].mxu0 }
 0x13e   :  { %177 = vst [vmem:[#allocation7] sm:$0xff] %v173_v28  ;;  %v262_v29 = vpop.f32.mrb[1].mxu0 }
 0x13f   :  { %358 = shalt.err (!%p355_p6)
}
 0x140   :  { %s359_s11 = scalar_lea.hbm %s459_s2, 128 }
 0x141   :  { %p360_p7 = scmp.ne.s32.totalorder %s459_s2, %s359_s11  ;;  %p363_p8 = scmp.lt.u32.totalorder %s359_s11, %s459_s2 }
 0x143   :  { %p365_p9 = pnand %p363_p8, %p360_p7 }
 0x145   :  { %368 = shalt.err (!%p365_p9)
}
 0x146   :  { %187 = dma.vmem_to_hbm [thread:$0]  %s185_s7, 128, %s459_s2, [#allocation4]  }
 0x147   :  { %373 = dma.done.wait [#allocation4], 128  }
 0x148   :  { %374 = vsyncadd [#allocation4], 4294967168 }
 0x149   :  { %191 = vsyncpa [#allocation3], 1 }
 0x14a   :  { %192 = vsyncpa [#allocation6], 1 }
 0x14b   :  { %193 = vsyncpa [#allocation4], 1 }

</bundles_post_ra>
